<compile_context>
chip_gen: v7x
topology: tpu7x:2x2x1
jax: 0.10.0
libtpu: 0.0.40
codegen_flags: <defaults>
</compile_context>

<pallas_src>
import math

import jax
import jax.numpy as jnp
from jax.experimental import pallas as pl
from jax.experimental.pallas import tpu as pltpu


def _mlp_kernel(user_ref, item_ref,
                w1u_ref, w1i_ref, b1_ref,
                w2_ref, b2_ref,
                w3_ref, b3_ref,
                wo_ref, bo_ref,
                out_ref):
    # bf16 operands for the MXU; f32 accumulation everywhere.
    u = user_ref[...].astype(jnp.bfloat16)
    v = item_ref[...].astype(jnp.bfloat16)

    # Layer 1: fused concat([user, item], 1) @ W1 + b1, then ReLU.
    h = (jnp.dot(u, w1u_ref[...], preferred_element_type=jnp.float32)
         + jnp.dot(v, w1i_ref[...], preferred_element_type=jnp.float32)
         + b1_ref[...])
    h = jnp.maximum(h, 0.0)

    # Hidden layer 1.
    h = (jnp.dot(h.astype(jnp.bfloat16), w2_ref[...],
                 preferred_element_type=jnp.float32) + b2_ref[...])
    h = jnp.maximum(h, 0.0)

    # Hidden layer 2.
    h = (jnp.dot(h.astype(jnp.bfloat16), w3_ref[...],
                 preferred_element_type=jnp.float32) + b3_ref[...])
    h = jnp.maximum(h, 0.0)

    # Output layer: N=1 matmul as a bf16 VPU multiply + f32 lane reduction.
    # wo_ref is (1, H) bf16; bo_ref is a (1, 1) scalar in SMEM.
    logit = jnp.sum(h.astype(jnp.bfloat16) * wo_ref[...], axis=-1,
                    keepdims=True, dtype=jnp.float32) + bo_ref[0, 0]
    rating = jax.nn.sigmoid(logit)                       # (TB, 1) f32
    # Lane-dense store: one (1, TB) row per grid step instead of a (TB, 1)
    # column of masked partial stores (small XLU transpose, unmasked vst).
    out_ref[...] = jnp.transpose(rating, (1, 0))


def _round_up(x, m):
    return ((x + m - 1) // m) * m


def _cdiv(a, b):
    return (a + b - 1) // b


def mlp_forward(user, item, params, *, block_b=1024):
    """user, item: (B, E) float32 or bfloat16. Returns (B,) float32 ratings."""
    B, E = user.shape
    H = params["b1"].shape[-1]

    # Batch tile: multiple of 8 (sublane), capped at block_b.
    TB = min(block_b, _round_up(B, 8))
    # v7x megacore: guarantee >= 2 grid steps on the "parallel" batch axis so
    # both TensorCores get work (no-op for tiny batches / 1-TC generations).
    if B > 8 and _cdiv(B, TB) < 2:
        TB = _round_up(_cdiv(B, 2), 8)
    grid_b = _cdiv(B, TB)
    # No wrapper-side jnp.pad: the last tile's out-of-range rows read
    # unspecified data, but rows are independent through every layer and the
    # corresponding output columns are sliced off below.

    def _resident(shape):
        # Full-array block, constant index_map, single buffer: DMA'd once and
        # VMEM-resident across all batch tiles at 1x (not 2x) footprint.
        return pl.BlockSpec(shape, lambda i: (0, 0),
                            pipeline_mode=pl.Buffered(1))

    # Derive the VMEM budget from the actual footprint instead of a flat 48MiB.
    itemsize = jnp.dtype(user.dtype).itemsize
    weight_bytes = sum(int(params[k].size) * jnp.dtype(params[k].dtype).itemsize
                       for k in ("w1u", "w1i", "b1", "w2", "b2", "w3", "b3", "wo"))
    io_bytes = 2 * 2 * TB * E * itemsize + 2 * TB * 4        # dbl-buffered tiles
    interm_bytes = 16 * TB * H                               # ~3x f32 + 1x bf16 (TB,H)
    vmem_limit = int(min(max(int(1.25 * (weight_bytes + io_bytes + interm_bytes))
                             + (8 << 20), 32 << 20), 100 << 20))

    rows = grid_b * TB
    cost = pl.CostEstimate(
        flops=int(2 * rows * (2 * E * H + 2 * H * H + H)),
        transcendentals=int(rows),
        bytes_accessed=int((user.size + item.size) * itemsize
                           + weight_bytes + rows * 4),
    )

    out = pl.pallas_call(
        _mlp_kernel,
        out_shape=jax.ShapeDtypeStruct((grid_b, TB), jnp.float32),
        grid=(grid_b,),
        in_specs=[
            pl.BlockSpec((TB, E), lambda i: (i, 0)),   # user tile
            pl.BlockSpec((TB, E), lambda i: (i, 0)),   # item tile
            _resident((E, H)),                         # w1u (bf16)
            _resident((E, H)),                         # w1i (bf16)
            _resident((1, H)),                         # b1  (f32)
            _resident((H, H)),                         # w2  (bf16)
            _resident((1, H)),                         # b2  (f32)
            _resident((H, H)),                         # w3  (bf16)
            _resident((1, H)),                         # b3  (f32)
            _resident((1, H)),                         # wo  (bf16)
            pl.BlockSpec(memory_space=pltpu.MemorySpace.SMEM),  # bo scalar
        ],
        out_specs=pl.BlockSpec((1, TB), lambda i: (i, 0)),
        compiler_params=pltpu.CompilerParams(
            dimension_semantics=("parallel",),
            vmem_limit_bytes=vmem_limit,
        ),
        cost_estimate=cost,
    )(
        user, item,
        params["w1u"], params["w1i"], params["b1"],
        params["w2"], params["b2"],
        params["w3"], params["b3"],
        params["wo"], params["bo"],
    )
    # TODO(synk): add an H-tiled (streamed w2/w3) path for H >= 2048 so the
    # kernel stays within v7x's 64 MiB VMEM; the fully-resident fast path here
    # targets H <= 1024.
    # torch.squeeze on the (B, 1) sigmoid output -> (B,)
    return out.reshape(-1)[:B]


def mlp_reference(user, item, params):
    """Pure-JAX f32 path (same stored weights, f32 math) for tolerance checks."""
    f32 = jnp.float32
    x = jnp.concatenate([user.astype(f32), item.astype(f32)], axis=1)
    w1 = jnp.concatenate([params["w1u"], params["w1i"]], axis=0).astype(f32)
    h = jnp.maximum(x @ w1 + params["b1"], 0.0)
    h = jnp.maximum(h @ params["w2"].astype(f32) + params["b2"], 0.0)
    h = jnp.maximum(h @ params["w3"].astype(f32) + params["b3"], 0.0)
    logit = h @ params["wo"].astype(f32).T + params["bo"]
    return jnp.squeeze(jax.nn.sigmoid(logit), axis=-1)


def _xavier_normal(key, fan_in, fan_out, shape, dtype):
    # Matches nn.init.xavier_normal_ (gain=1): std = sqrt(2 / (fan_in + fan_out)).
    std = math.sqrt(2.0 / (fan_in + fan_out))
    return (std * jax.random.normal(key, shape, dtype=jnp.float32)).astype(dtype)


def _linear_bias(key, fan_in, fan_out):
    # PyTorch Linear default bias init: U(-1/sqrt(fan_in), 1/sqrt(fan_in)).
    bound = 1.0 / math.sqrt(fan_in)
    return jax.random.uniform(key, (1, fan_out), dtype=jnp.float32,
                              minval=-bound, maxval=bound)


def init_mlp_params(key, emsize, hidden_size=1024, num_layers=2):
    assert num_layers == 2, "kernel is specialized for the default num_layers=2"
    ks = jax.random.split(key, 8)
    E, H = emsize, hidden_size
    # First-layer weight stored transposed vs. PyTorch ((2E, H)) and split so
    # the concat is fused as two dots. Matmul weights are bf16 for the MXU;
    # biases stay f32, output bias is an SMEM scalar.
    # TODO(synk): optional fp8 (e4m3) w2/w3 with per-channel scales for v7x's
    # fp8 MXU; validate numerics against the f32 reference before adopting.
    w1 = _xavier_normal(ks[0], 2 * E, H, (2 * E, H), jnp.bfloat16)
    return {
        "w1u": w1[:E, :],                                            # (E, H) bf16
        "w1i": w1[E:, :],                                            # (E, H) bf16
        "b1": _linear_bias(ks[1], 2 * E, H),                         # (1, H) f32
        "w2": _xavier_normal(ks[2], H, H, (H, H), jnp.bfloat16),     # (H, H) bf16
        "b2": _linear_bias(ks[3], H, H),                             # (1, H) f32
        "w3": _xavier_normal(ks[4], H, H, (H, H), jnp.bfloat16),     # (H, H) bf16
        "b3": _linear_bias(ks[5], H, H),                             # (1, H) f32
        "wo": _xavier_normal(ks[6], H, 1, (1, H), jnp.bfloat16),     # (1, H) bf16
        "bo": _linear_bias(ks[7], H, 1),                             # (1, 1) f32
    }


if __name__ == "__main__":
    # Small deterministic shapes: batch=8, emsize=16, hidden=32, num_layers=2.
    B, E, H = 8, 16, 32
    key = jax.random.PRNGKey(0)
    k_params, k_user, k_item = jax.random.split(key, 3)

    params = init_mlp_params(k_params, emsize=E, hidden_size=H, num_layers=2)
    user = jax.random.normal(k_user, (B, E), dtype=jnp.float32)
    item = jax.random.normal(k_item, (B, E), dtype=jnp.float32)

    rating = jax.block_until_ready(mlp_forward(user, item, params))
    assert rating.shape == (B,), rating.shape
    assert bool(jnp.all((rating >= 0.0) & (rating <= 1.0)))

    ref = jax.block_until_ready(mlp_reference(user, item, params))
    assert bool(jnp.allclose(rating, ref, atol=1e-2, rtol=1e-2)), (
        float(jnp.max(jnp.abs(rating - ref))))
    print("KERNEL_OK")
</pallas_src>

<mosaic_0001>
module attributes {stable_mosaic.version = 11 : i64} {
  func.func @_mlp_kernel(%arg0: i32, %arg1: memref<8x16xf32, #tpu.memory_space<vmem>>, %arg2: memref<8x16xf32, #tpu.memory_space<vmem>>, %arg3: memref<16x32xbf16, #tpu.memory_space<vmem>>, %arg4: memref<16x32xbf16, #tpu.memory_space<vmem>>, %arg5: memref<1x32xf32, #tpu.memory_space<vmem>>, %arg6: memref<32x32xbf16, #tpu.memory_space<vmem>>, %arg7: memref<1x32xf32, #tpu.memory_space<vmem>>, %arg8: memref<32x32xbf16, #tpu.memory_space<vmem>>, %arg9: memref<1x32xf32, #tpu.memory_space<vmem>>, %arg10: memref<1x32xbf16, #tpu.memory_space<vmem>>, %arg11: memref<1x1xf32, #tpu.memory_space<smem>>, %arg12: memref<1x8xf32, #tpu.memory_space<vmem>>) attributes {dimension_semantics = [#tpu.dimension_semantics<parallel>], iteration_bounds = array<i64: 1>, scalar_prefetch = 0 : i64, scratch_operands = 0 : i64, tpu.core_type = #tpu.core_type<tc>, window_params = [{transform_indices = @transform_0, window_bounds = array<i64: 8, 16>}, {transform_indices = @transform_1, window_bounds = array<i64: 8, 16>}, {pipeline_mode = #tpu.pipeline_mode<synchronous>, transform_indices = @transform_2, window_bounds = array<i64: 16, 32>}, {pipeline_mode = #tpu.pipeline_mode<synchronous>, transform_indices = @transform_3, window_bounds = array<i64: 16, 32>}, {pipeline_mode = #tpu.pipeline_mode<synchronous>, transform_indices = @transform_4, window_bounds = array<i64: 1, 32>}, {pipeline_mode = #tpu.pipeline_mode<synchronous>, transform_indices = @transform_5, window_bounds = array<i64: 32, 32>}, {pipeline_mode = #tpu.pipeline_mode<synchronous>, transform_indices = @transform_6, window_bounds = array<i64: 1, 32>}, {pipeline_mode = #tpu.pipeline_mode<synchronous>, transform_indices = @transform_7, window_bounds = array<i64: 32, 32>}, {pipeline_mode = #tpu.pipeline_mode<synchronous>, transform_indices = @transform_8, window_bounds = array<i64: 1, 32>}, {pipeline_mode = #tpu.pipeline_mode<synchronous>, transform_indices = @transform_9, window_bounds = array<i64: 1, 32>}, {transform_indices = @transform_10, window_bounds = array<i64: 1, 1>}, {transform_indices = @transform_11, window_bounds = array<i64: 1, 8>}]} {
    %c0 = arith.constant 0 : index
    %c0_0 = arith.constant 0 : index
    %0 = vector.load %arg1[%c0, %c0_0] : memref<8x16xf32, #tpu.memory_space<vmem>>, vector<8x16xf32>
    %1 = arith.truncf %0 : vector<8x16xf32> to vector<8x16xbf16>
    %c0_1 = arith.constant 0 : index
    %c0_2 = arith.constant 0 : index
    %2 = vector.load %arg2[%c0_1, %c0_2] : memref<8x16xf32, #tpu.memory_space<vmem>>, vector<8x16xf32>
    %3 = arith.truncf %2 : vector<8x16xf32> to vector<8x16xbf16>
    %c0_3 = arith.constant 0 : index
    %c0_4 = arith.constant 0 : index
    %4 = vector.load %arg3[%c0_3, %c0_4] : memref<16x32xbf16, #tpu.memory_space<vmem>>, vector<16x32xbf16>
    %cst = arith.constant dense<0.000000e+00> : vector<8x32xf32>
    %5 = tpu.matmul %1, %4, %cst {dimension_numbers = #tpu.dot_dimension_numbers<[1], [0], [0], [1], [0, 0, 1, 1], [], []>} : vector<8x16xbf16>, vector<16x32xbf16>, vector<8x32xf32> -> vector<8x32xf32>
    %c0_5 = arith.constant 0 : index
    %c0_6 = arith.constant 0 : index
    %6 = vector.load %arg4[%c0_5, %c0_6] : memref<16x32xbf16, #tpu.memory_space<vmem>>, vector<16x32xbf16>
    %cst_7 = arith.constant dense<0.000000e+00> : vector<8x32xf32>
    %7 = tpu.matmul %3, %6, %cst_7 {dimension_numbers = #tpu.dot_dimension_numbers<[1], [0], [0], [1], [0, 0, 1, 1], [], []>} : vector<8x16xbf16>, vector<16x32xbf16>, vector<8x32xf32> -> vector<8x32xf32>
    %8 = arith.addf %5, %7 : vector<8x32xf32>
    %c0_8 = arith.constant 0 : index
    %c0_9 = arith.constant 0 : index
    %9 = vector.load %arg5[%c0_8, %c0_9] : memref<1x32xf32, #tpu.memory_space<vmem>>, vector<1x32xf32>
    %10 = vector.broadcast %9 : vector<1x32xf32> to vector<8x32xf32>
    %11 = arith.addf %8, %10 : vector<8x32xf32>
    %cst_10 = arith.constant 0.000000e+00 : f32
    %12 = vector.broadcast %cst_10 : f32 to vector<8x32xf32>
    %13 = arith.maximumf %11, %12 : vector<8x32xf32>
    %14 = arith.truncf %13 : vector<8x32xf32> to vector<8x32xbf16>
    %c0_11 = arith.constant 0 : index
    %c0_12 = arith.constant 0 : index
    %15 = vector.load %arg6[%c0_11, %c0_12] : memref<32x32xbf16, #tpu.memory_space<vmem>>, vector<32x32xbf16>
    %cst_13 = arith.constant dense<0.000000e+00> : vector<8x32xf32>
    %16 = tpu.matmul %14, %15, %cst_13 {dimension_numbers = #tpu.dot_dimension_numbers<[1], [0], [0], [1], [0, 0, 1, 1], [], []>} : vector<8x32xbf16>, vector<32x32xbf16>, vector<8x32xf32> -> vector<8x32xf32>
    %c0_14 = arith.constant 0 : index
    %c0_15 = arith.constant 0 : index
    %17 = vector.load %arg7[%c0_14, %c0_15] : memref<1x32xf32, #tpu.memory_space<vmem>>, vector<1x32xf32>
    %18 = vector.broadcast %17 : vector<1x32xf32> to vector<8x32xf32>
    %19 = arith.addf %16, %18 : vector<8x32xf32>
    %cst_16 = arith.constant 0.000000e+00 : f32
    %20 = vector.broadcast %cst_16 : f32 to vector<8x32xf32>
    %21 = arith.maximumf %19, %20 : vector<8x32xf32>
    %22 = arith.truncf %21 : vector<8x32xf32> to vector<8x32xbf16>
    %c0_17 = arith.constant 0 : index
    %c0_18 = arith.constant 0 : index
    %23 = vector.load %arg8[%c0_17, %c0_18] : memref<32x32xbf16, #tpu.memory_space<vmem>>, vector<32x32xbf16>
    %cst_19 = arith.constant dense<0.000000e+00> : vector<8x32xf32>
    %24 = tpu.matmul %22, %23, %cst_19 {dimension_numbers = #tpu.dot_dimension_numbers<[1], [0], [0], [1], [0, 0, 1, 1], [], []>} : vector<8x32xbf16>, vector<32x32xbf16>, vector<8x32xf32> -> vector<8x32xf32>
    %c0_20 = arith.constant 0 : index
    %c0_21 = arith.constant 0 : index
    %25 = vector.load %arg9[%c0_20, %c0_21] : memref<1x32xf32, #tpu.memory_space<vmem>>, vector<1x32xf32>
    %26 = vector.broadcast %25 : vector<1x32xf32> to vector<8x32xf32>
    %27 = arith.addf %24, %26 : vector<8x32xf32>
    %cst_22 = arith.constant 0.000000e+00 : f32
    %28 = vector.broadcast %cst_22 : f32 to vector<8x32xf32>
    %29 = arith.maximumf %27, %28 : vector<8x32xf32>
    %30 = arith.truncf %29 : vector<8x32xf32> to vector<8x32xbf16>
    %c0_23 = arith.constant 0 : index
    %c0_24 = arith.constant 0 : index
    %31 = vector.load %arg10[%c0_23, %c0_24] : memref<1x32xbf16, #tpu.memory_space<vmem>>, vector<1x32xbf16>
    %32 = vector.broadcast %31 : vector<1x32xbf16> to vector<8x32xbf16>
    %33 = arith.mulf %30, %32 : vector<8x32xbf16>
    %34 = arith.extf %33 : vector<8x32xbf16> to vector<8x32xf32>
    %cst_25 = arith.constant dense<0.000000e+00> : vector<8xf32>
    %35 = vector.multi_reduction <add>, %34, %cst_25 [1] : vector<8x32xf32> to vector<8xf32>
    %36 = vector.shape_cast %35 : vector<8xf32> to vector<8x1xf32>
    %c0_26 = arith.constant 0 : index
    %c0_27 = arith.constant 0 : index
    %37 = memref.load %arg11[%c0_26, %c0_27] : memref<1x1xf32, #tpu.memory_space<smem>>
    %38 = vector.broadcast %37 : f32 to vector<8x1xf32>
    %39 = arith.addf %36, %38 : vector<8x1xf32>
    %40 = arith.negf %39 : vector<8x1xf32>
    %41 = math.exp %40 : vector<8x1xf32>
    %cst_28 = arith.constant 1.000000e+00 : f32
    %42 = vector.broadcast %cst_28 : f32 to vector<8x1xf32>
    %43 = arith.addf %42, %41 : vector<8x1xf32>
    %44 = arith.divf %42, %43 : vector<8x1xf32>
    %45 = tpu.transpose %44, [1, 0] : vector<8x1xf32> -> vector<1x8xf32>
    %c0_29 = arith.constant 0 : index
    %c0_30 = arith.constant 0 : index
    %46 = vector.load %arg12[%c0_29, %c0_30] : memref<1x8xf32, #tpu.memory_space<vmem>>, vector<1x8xf32>
    tpu.vector_store %arg12[%c0_29, %c0_30], %45 {strides = array<i32>} : memref<1x8xf32, #tpu.memory_space<vmem>>, vector<1x8xf32>,
    return
  }
  func.func @transform_0(%arg0: i32) -> (i32, i32) {
    %c0_i32 = arith.constant 0 : i32
    %c0_i32_0 = arith.constant 0 : i32
    return %arg0, %c0_i32 : i32, i32
  }
  func.func @transform_1(%arg0: i32) -> (i32, i32) {
    %c0_i32 = arith.constant 0 : i32
    %c0_i32_0 = arith.constant 0 : i32
    return %arg0, %c0_i32 : i32, i32
  }
  func.func @transform_2(%arg0: i32) -> (i32, i32) {
    %c0_i32 = arith.constant 0 : i32
    %c0_i32_0 = arith.constant 0 : i32
    %c0_i32_1 = arith.constant 0 : i32
    return %c0_i32, %c0_i32_0 : i32, i32
  }
  func.func @transform_3(%arg0: i32) -> (i32, i32) {
    %c0_i32 = arith.constant 0 : i32
    %c0_i32_0 = arith.constant 0 : i32
    %c0_i32_1 = arith.constant 0 : i32
    return %c0_i32, %c0_i32_0 : i32, i32
  }
  func.func @transform_4(%arg0: i32) -> (i32, i32) {
    %c0_i32 = arith.constant 0 : i32
    %c0_i32_0 = arith.constant 0 : i32
    %c0_i32_1 = arith.constant 0 : i32
    return %c0_i32, %c0_i32_0 : i32, i32
  }
  func.func @transform_5(%arg0: i32) -> (i32, i32) {
    %c0_i32 = arith.constant 0 : i32
    %c0_i32_0 = arith.constant 0 : i32
    %c0_i32_1 = arith.constant 0 : i32
    return %c0_i32, %c0_i32_0 : i32, i32
  }
  func.func @transform_6(%arg0: i32) -> (i32, i32) {
    %c0_i32 = arith.constant 0 : i32
    %c0_i32_0 = arith.constant 0 : i32
    %c0_i32_1 = arith.constant 0 : i32
    return %c0_i32, %c0_i32_0 : i32, i32
  }
  func.func @transform_7(%arg0: i32) -> (i32, i32) {
    %c0_i32 = arith.constant 0 : i32
    %c0_i32_0 = arith.constant 0 : i32
    %c0_i32_1 = arith.constant 0 : i32
    return %c0_i32, %c0_i32_0 : i32, i32
  }
  func.func @transform_8(%arg0: i32) -> (i32, i32) {
    %c0_i32 = arith.constant 0 : i32
    %c0_i32_0 = arith.constant 0 : i32
    %c0_i32_1 = arith.constant 0 : i32
    return %c0_i32, %c0_i32_0 : i32, i32
  }
  func.func @transform_9(%arg0: i32) -> (i32, i32) {
    %c0_i32 = arith.constant 0 : i32
    %c0_i32_0 = arith.constant 0 : i32
    %c0_i32_1 = arith.constant 0 : i32
    return %c0_i32, %c0_i32_0 : i32, i32
  }
  func.func @transform_10(%arg0: i32) -> (i32, i32) {
    %c0_i32 = arith.constant 0 : i32
    %c0_i32_0 = arith.constant 0 : i32
    %c0_i32_1 = arith.constant 0 : i32
    return %c0_i32, %c0_i32_0 : i32, i32
  }
  func.func @transform_11(%arg0: i32) -> (i32, i32) {
    %c0_i32 = arith.constant 0 : i32
    %c0_i32_0 = arith.constant 0 : i32
    return %arg0, %c0_i32 : i32, i32
  }
}

</mosaic_0001>

<bundles_post_ra>
// kernel: tpu_custom_call.1
= control target key start
LH: loop header
LB: loop body
LE: loop exit
PB: predicated region body
PF: predicated region fallthrough
CT: control target
= control target key end

     0   :  { %17 = vsyncpa [#allocation4], 0  ;;  %s823_s0 = inlined_call_operand.hbm [shape: f32[8,16], index: 0, kind: input, shape index: {}]   ;;  %s824_s1 = inlined_call_operand.hbm [shape: f32[8,16], index: 1, kind: input, shape index: {}]   ;;  %s825_s2 = inlined_call_operand.hbm [shape: bf16[16,32], index: 2, kind: input, shape index: {}]   ;;  %s826_s3 = inlined_call_operand.hbm [shape: bf16[16,32], index: 3, kind: input, shape index: {}]   ;;  %s827_s4 = inlined_call_operand.vmem [shape: f32[1,32], index: 4, kind: input, shape index: {}]   ;;  %s828_s5 = inlined_call_operand.vmem [shape: bf16[32,32], index: 5, kind: input, shape index: {}]   ;;  %s829_s6 = inlined_call_operand.vmem [shape: f32[1,32], index: 6, kind: input, shape index: {}]   ;;  %s830_s7 = inlined_call_operand.hbm [shape: bf16[32,32], index: 7, kind: input, shape index: {}]   ;;  %s831_s8 = inlined_call_operand.vmem [shape: f32[1,32], index: 8, kind: input, shape index: {}]   ;;  %s832_s9 = inlined_call_operand.vmem [shape: bf16[1,32], index: 9, kind: input, shape index: {}]   ;;  %s833_s10 = inlined_call_operand.<no memory space> [shape: f32[1,1], index: 10, kind: input, shape index: {}]   ;;  %s834_s11 = inlined_call_operand.hbm [shape: f32[1,8], index: 11, kind: output, shape index: {}]  }
   0x1   :  { %18 = vsyncpa [#allocation7], 0 }
   0x2   :  { %19 = vsyncpa [#allocation10], 0 }
   0x3   :  { %20 = vsyncpa [#allocation5], 0  ;;  %s644_s17 = smov [#allocation6]   ;;  %s504_s21 = scalar_lea.hbm %s824_s1, 128 }
   0x4   :  { %s37_s18 = sshll.u32 %s644_s17, 4  ;;  %p505_p0 = scmp.ne.s32.totalorder %s824_s1, %s504_s21  ;;  %s38_s18 = int_to_ptr.vmem [resolvable:$true] %s37_s18 }
   0x5   :  { %p508_p1 = scmp.lt.u32.totalorder %s504_s21, %s824_s1 }
   0x7   :  { %p510_p2 = pnand %p508_p1, %p505_p0 }
   0x9   :  { %513 = shalt.err (!%p510_p2)
}
   0xa   :  { %s514_s26 = scalar_lea.vmem %s38_s18, 128  ;;  %p519_p4 = scmp.lt.s32.totalorder %s38_s18, %s38_s18 }
   0xb   :  { %p515_p3 = scmp.ne.s32.totalorder %s38_s18, %s514_s26  ;;  %p520_p5 = scmp.lt.s32.totalorder %s514_s26, %s514_s26 }
   0xd   :  { %p521_p6 = por %p520_p5, %p519_p4 }
   0xf   :  { %p522_p7 = pnand %p521_p6, %p515_p3 }
  0x11   :  { %525 = shalt.err (!%p522_p7)
}
  0x12   :  { %40 = dma.hbm_to_vmem [thread:$0]  %s824_s1, 128, %s38_s18, [#allocation7]  }
  0x13   :  { %s645_s29 = smov [#allocation9]   ;;  %s646_s12 = smov [#allocation3]  }
  0x14   :  { %s58_s30 = sshll.u32 %s645_s29, 4  ;;  %s27_s13 = sshll.u32 %s646_s12, 4  ;;  %s59_s30 = int_to_ptr.vmem [resolvable:$true] %s58_s30  ;;  %s28_s13 = int_to_ptr.vmem [resolvable:$true] %s27_s13 }
  0x15   :  { %s526_s16 = scalar_lea.hbm %s826_s3, 128 }
  0x16   :  { %p527_p8 = scmp.ne.s32.totalorder %s826_s3, %s526_s16  ;;  %p530_p9 = scmp.lt.u32.totalorder %s526_s16, %s826_s3 }
  0x18   :  { %p532_p10 = pnand %p530_p9, %p527_p8 }
  0x1a   :  { %535 = shalt.err (!%p532_p10)
}
  0x1b   :  { %s536_s1 = scalar_lea.vmem %s59_s30, 128  ;;  %p541_p12 = scmp.lt.s32.totalorder %s59_s30, %s59_s30 }
  0x1c   :  { %p537_p11 = scmp.ne.s32.totalorder %s59_s30, %s536_s1  ;;  %p542_p13 = scmp.lt.s32.totalorder %s536_s1, %s536_s1 }
  0x1e   :  { %p543_p0 = por %p542_p13, %p541_p12 }
  0x20   :  { %p544_p1 = pnand %p543_p0, %p537_p11 }
  0x22   :  { %547 = shalt.err (!%p544_p1)
}
  0x23   :  { %s647_s18 = smov 64   ;;  %s648_s22 = smov 4  }
  0x24   :  { %64 = dma.hbm_to_vmem [thread:$0]  %s826_s3, 128, %s59_s30, [#allocation10], %s647_s18, %s647_s18, %s648_s22  }
  0x25   :  { %s548_s27 = scalar_lea.hbm %s823_s0, 128 }
  0x26   :  { %p549_p2 = scmp.ne.s32.totalorder %s823_s0, %s548_s27  ;;  %p552_p3 = scmp.lt.u32.totalorder %s548_s27, %s823_s0 }
  0x28   :  { %p554_p4 = pnand %p552_p3, %p549_p2 }
  0x2a   :  { %557 = shalt.err (!%p554_p4)
}
  0x2b   :  { %s558_s15 = scalar_lea.vmem %s28_s13, 128  ;;  %p563_p6 = scmp.lt.s32.totalorder %s28_s13, %s28_s13 }
  0x2c   :  { %p559_p5 = scmp.ne.s32.totalorder %s28_s13, %s558_s15  ;;  %p564_p7 = scmp.lt.s32.totalorder %s558_s15, %s558_s15 }
  0x2e   :  { %p565_p8 = por %p564_p7, %p563_p6 }
  0x30   :  { %p566_p9 = pnand %p565_p8, %p559_p5 }
  0x32   :  { %569 = shalt.err (!%p566_p9)
}
  0x33   :  { %30 = dma.hbm_to_vmem [thread:$0]  %s823_s0, 128, %s28_s13, [#allocation4]  }
  0x34   :  { %s649_s16 = smov [#allocation8]   ;;  %s650_s19 = smov [#allocation11]  }
  0x35   :  { %s46_s17 = sshll.u32 %s649_s16, 4  ;;  %s76_s20 = sshll.u32 %s650_s19, 4  ;;  %s47_s17 = int_to_ptr.vmem [resolvable:$true] %s46_s17  ;;  %s77_s20 = int_to_ptr.vmem [resolvable:$true] %s76_s20 }
  0x36   :  { %s570_s23 = scalar_lea.hbm %s825_s2, 128 }
  0x37   :  { %p571_p10 = scmp.ne.s32.totalorder %s825_s2, %s570_s23  ;;  %p574_p11 = scmp.lt.u32.totalorder %s570_s23, %s825_s2 }
  0x39   :  { %p576_p12 = pnand %p574_p11, %p571_p10 }
  0x3b   :  { %579 = shalt.err (!%p576_p12)
}
  0x3c   :  { %s580_s0 = scalar_lea.vmem %s47_s17, 128  ;;  %p585_p0 = scmp.lt.s32.totalorder %s47_s17, %s47_s17 }
  0x3d   :  { %p581_p13 = scmp.ne.s32.totalorder %s47_s17, %s580_s0  ;;  %p586_p1 = scmp.lt.s32.totalorder %s580_s0, %s580_s0 }
  0x3f   :  { %p587_p2 = por %p586_p1, %p585_p0 }
  0x41   :  { %p588_p3 = pnand %p587_p2, %p581_p13 }
  0x43   :  { %591 = shalt.err (!%p588_p3)
}
  0x44   :  { %52 = dma.hbm_to_vmem [thread:$0]  %s825_s2, 128, %s47_s17, [#allocation7], %s647_s18, %s647_s18, %s648_s22  }
  0x45   :  { %s592_s14 = scalar_lea.hbm %s830_s7, 256 }
  0x46   :  { %p593_p4 = scmp.ne.s32.totalorder %s830_s7, %s592_s14  ;;  %p596_p5 = scmp.lt.u32.totalorder %s592_s14, %s830_s7 }
  0x48   :  { %p598_p6 = pnand %p596_p5, %p593_p4 }
  0x4a   :  { %601 = shalt.err (!%p598_p6)
}
  0x4b   :  { %s602_s19 = scalar_lea.vmem %s77_s20, 256  ;;  %p607_p8 = scmp.lt.s32.totalorder %s77_s20, %s77_s20 }
  0x4c   :  { %p603_p7 = scmp.ne.s32.totalorder %s77_s20, %s602_s19  ;;  %p608_p9 = scmp.lt.s32.totalorder %s602_s19, %s602_s19 }
  0x4e   :  { %p609_p10 = por %p608_p9, %p607_p8 }
  0x50   :  { %p610_p11 = pnand %p609_p10, %p603_p7 }
  0x52   :  { %613 = shalt.err (!%p610_p11)
}
  0x53   :  { %82 = dma.hbm_to_vmem [thread:$0]  %s830_s7, 256, %s77_s20, [#allocation10], %s647_s18, %s647_s18, %s648_s22  }
  0x54   :  { %636 = dma.done.wait [#allocation4], 128  }
  0x55   :  { %637 = vsyncadd [#allocation4], 4294967168 }
  0x56   :  { %638 = dma.done.wait [#allocation7], 256  }
  0x57   :  { %639 = vsyncadd [#allocation7], 4294967040 }
  0x58   :  { %640 = dma.done.wait [#allocation10], 384  }
  0x59   :  { %641 = vsyncadd [#allocation10], 4294966912  ;;  %v651_v0 = vmov 0.0   ;;  %vm652_vm0 = vmmov 0   ;;  %v494_v1 = vld [vmem:[#allocation9] sm:$0xff]   ;;  %v495_v2 = vld [vmem:[#allocation8] sm:$0xff]   ;;  %v363_v32 = vlaneseq  ;;  %v373_v49 = vstv %s833_s10 }
  0x5a   :  { %456 = vmatprep.subr.bf16.mxu0 %v651_v0  ;;  %462 = vmatprep.subr.bf16.mxu1 %v651_v0  ;;  %v107_v3 = vld [vmem:[#allocation6] sm:$0xff]  ;;  %vm119_vm1 = vcmask 130048   ;;  %v105_v4 = vld [vmem:[#allocation3] sm:$0xff]  ;;  %vm245_vm2 = vcmask 261120   ;;  %vm413_vm3 = vcmask 57344  }
  0x5b   :  { %458 = vmatprep.mubr.msk.bf16.mxu0 %vm652_vm0, %v651_v0  ;;  %464 = vmatprep.mubr.msk.bf16.mxu1 %vm652_vm0, %v651_v0  ;;  %v108_v5 = vpack.c.bf16 %v107_v3, %v107_v3  ;;  %v106_v6 = vpack.c.bf16 %v105_v4, %v105_v4  ;;  %v496_v7 = vld [vmem:[%s828_s5] sm:$0xff]   ;;  %v497_v8 = vld [vmem:[%s828_s5 + $0x8] sm:$0xff]   ;;  %v364_v33 = vshrl.u32 %v363_v32, 7 }
  0x5c   :  { %457 = vmatpush3.bf16.msra.mxu0 %v494_v1  ;;  %463 = vmatpush3.bf16.msra.mxu1 %v495_v2  ;;  %v498_v9 = vld [vmem:[#allocation11] sm:$0xff]   ;;  %v499_v23 = vld [vmem:[#allocation11 + $0x8] sm:$0xff]  }
  0x5d   :  { %468 = vmatprep.subr.bf16.mxu0 %v651_v0  ;;  %476 = vmatprep.subr.bf16.mxu1 %v651_v0  ;;  %v436_v12 = vld [vmem:[%s827_s4] ss:$0 sm:$0xff]  ;;  %v365_v37 = vsub.s32 0, %v364_v33 }
  0x5e   :  { %v437_v24 = vld [vmem:[%s829_s6] ss:$0 sm:$0xff] }
  0x5f   :  { %459 = vmatmul.mubr.msk.bf16.vlgmr.msra.gmra.mrb[0].mxu0 %vm119_vm1, %v108_v5  ;;  %465 = vmatmul.mubr.msk.bf16.vlgmr.msra.gmra.mrb[0].mxu1 %vm119_vm1, %v106_v6  ;;  %v359_v34 = vld [vmem:[%s832_s9] sm:$0x1] }
  0x60   :  { %472 = vmatprep.mubr.msk.bf16.mxu0 %vm652_vm0, %v651_v0  ;;  %480 = vmatprep.mubr.msk.bf16.mxu1 %vm652_vm0, %v651_v0  ;;  %v441_v35 = vld [vmem:[%s831_s8] ss:$0 sm:$0xff]  ;;  %v361_v36 = vpack.i.b16 %v359_v34, %v359_v34  ;;  %s653_s8 = smov [#allocation12]  }
  0x61   :  { %469 = vmatpush3.bf16.msra.mxu0 %v496_v7  ;;  %477 = vmatpush3.bf16.msra.mxu1 %v498_v9  ;;  %s421_s27 = sshll.u32 %s653_s8, 4  ;;  %s422_s27 = int_to_ptr.vmem [resolvable:$true] %s421_s27 }
  0x62   :  { %470 = vmatprep.subr.bf16.mxu0 %v651_v0  ;;  %478 = vmatprep.subr.bf16.mxu1 %v651_v0  ;;  %v366_v44 = vrot.slane %v361_v36, %v365_v37  ;;  %s614_s0 = scalar_lea.vmem %s422_s27, 16  ;;  %s618_s13 = scalar_lea.vmem %s422_s27, 32 }
  0x63   :  { %p615_p12 = scmp.ne.s32.totalorder %s422_s27, %s614_s0  ;;  %p619_p13 = scmp.lt.s32.totalorder %s422_s27, %s422_s27 }
  0x64   :  { %p620_p0 = scmp.lt.s32.totalorder %s618_s13, %s614_s0 }
  0x65   :  { %471 = vmatpush3.bf16.msra.mxu0 %v497_v8  ;;  %479 = vmatpush3.bf16.msra.mxu1 %v499_v23 }
  0x66   :  { %p621_p1 = por %p620_p0, %p619_p13 }
  0x68   :  { %p622_p2 = pnand %p621_p1, %p615_p12 }
 0x132   :  { %v157_v10 = vpop.f32.mrb[0].mxu0  ;;  %v206_v11 = vpop.f32.mrb[0].mxu1 }
 0x133   :  { %v460_v13 = vpop.f32.mrb[1].mxu0  ;;  %v207_v14 = vadd.f32 %v206_v11, %v157_v10  ;;  %v466_v15 = vpop.f32.mrb[1].mxu1 }
 0x134   :  { %v160_v16 = vpop.f32.mrb[2].mxu0  ;;  %v209_v17 = vpop.f32.mrb[2].mxu1 }
 0x135   :  { %v461_v18 = vpop.f32.mrb[3].mxu0  ;;  %v219_v19 = vadd.f32 %v436_v12, %v207_v14  ;;  %v467_v20 = vpop.f32.mrb[3].mxu1 }
 0x137   :  { %v220_v21 = vmax.f32 %v219_v19, 0.0 }
 0x139   :  { %v221_v22 = vpack.c.bf16 %v220_v21, %v220_v21 }
 0x13b   :  { %473 = vmatmul.mubr.msk.bf16.vlgmr.msra.gmra.mrb[4].mxu0 %vm245_vm2, %v221_v22 }
 0x20e   :  { %v283_v25 = vpop.f32.mrb[4].mxu0 }
 0x20f   :  { %v284_v26 = vadd.f32 %v437_v24, %v283_v25  ;;  %v474_v27 = vpop.f32.mrb[5].mxu0 }
 0x210   :  { %v286_v28 = vpop.f32.mrb[6].mxu0 }
 0x211   :  { %v289_v29 = vmax.f32 %v284_v26, 0.0  ;;  %v475_v30 = vpop.f32.mrb[7].mxu0 }
 0x213   :  { %v290_v31 = vpack.c.bf16 %v289_v29, %v289_v29 }
 0x215   :  { %481 = vmatmul.mubr.msk.bf16.vlgmr.msra.gmra.mrb[4].mxu1 %vm245_vm2, %v290_v31 }
 0x2e8   :  { %v351_v38 = vpop.f32.mrb[4].mxu1 }
 0x2e9   :  { %v352_v39 = vadd.f32 %v441_v35, %v351_v38  ;;  %v482_v40 = vpop.f32.mrb[5].mxu1 }
 0x2ea   :  { %v354_v41 = vpop.f32.mrb[6].mxu1 }
 0x2eb   :  { %v357_v42 = vmax.f32 %v352_v39, 0.0  ;;  %v483_v43 = vpop.f32.mrb[7].mxu1 }
 0x2ed   :  { %v358_v45 = vpack.c.bf16 %v357_v42, %v357_v42 }
 0x2ef   :  { %v367_v46 = vmul.bf16 %v366_v44, %v358_v45 }
 0x2f1   :  { %v368_v47 = vunpack.c.l.bf16 %v367_v46 }
 0x2f3   :  { %v369_v48 = vsel %vm245_vm2, %v368_v47, 0.0 }
 0x2f4   :  { %370 = vadd.xlane.f32.xlu0 %v369_v48 }
 0x381   :  { %v371_v50 = vpop.xlane.xlu0 %370 }
 0x382   :  { %v374_v51 = vadd.f32 %v373_v49, %v371_v50 }
 0x384   :  { %v445_v52 = vmul.f32 -1.442695, %v374_v51 }
 0x386   :  { %500 = vpow2.f32 %v445_v52 }
 0x390   :  { %v501_v53 = vpop.eup %500 }
 0x391   :  { %v378_v54 = vadd.f32 1.0, %v501_v53 }
 0x393   :  { %502 = vrcp.f32 %v378_v54 }
 0x39d   :  { %v503_v55 = vpop.eup %502 }
 0x39e   :  { %381 = vxpose.xlu0.b32.start.end [1/1] (short) (narrow) %v503_v55, 8 }
 0x41e   :  { %v397_v56 = vpop.trf.xlu0 }
 0x41f   :  { %414 = vst.msk [vmem:[#allocation12] sm:$0x1] %vm413_vm3, %v397_v56 }
 0x420   :  { %625 = shalt.err (!%p622_p2)
}
 0x421   :  { %s626_s29 = scalar_lea.hbm %s834_s11, 16 }
 0x422   :  { %p627_p3 = scmp.ne.s32.totalorder %s834_s11, %s626_s29  ;;  %p630_p4 = scmp.lt.u32.totalorder %s626_s29, %s834_s11 }
 0x424   :  { %p632_p5 = pnand %p630_p4, %p627_p3 }
 0x426   :  { %635 = shalt.err (!%p632_p5)
}
 0x427   :  { %424 = dma.vmem_to_hbm [thread:$0]  %s422_s27, 16, %s834_s11, [#allocation5]  }
 0x428   :  { %642 = dma.done.wait [#allocation5], 16  }
 0x429   :  { %643 = vsyncadd [#allocation5], 4294967280 }
 0x42a   :  { %428 = vsyncpa [#allocation4], 1 }
 0x42b   :  { %429 = vsyncpa [#allocation7], 1 }
 0x42c   :  { %430 = vsyncpa [#allocation10], 1 }
 0x42d   :  { %431 = vsyncpa [#allocation5], 1 }

</bundles_post_ra>
